<compile_context>
chip_gen: v6e
topology: v6e:2x2x1
jax: 0.10.0
libtpu: 0.0.40
codegen_flags: <defaults>
</compile_context>

<pallas_src>
import math
import functools

import jax
import jax.numpy as jnp
from jax.experimental import pallas as pl
from jax.experimental.pallas import tpu as pltpu


def _round_up(v, m):
    return (v + m - 1) // m * m


def _sublane_multiple(dtype):
    """Minimum sublane multiple for the second-to-last block dim, per dtype packing."""
    return {4: 8, 2: 16, 1: 32}.get(jnp.dtype(dtype).itemsize, 8)


def _device_defaults():
    """(tm, tn, tk, vmem_limit_bytes, device_kind) per TPU generation."""
    try:
        kind = jax.devices()[0].device_kind.lower()
    except Exception:
        kind = ""
    if "v6" in kind:
        # 128 MiB physical VMEM, 2x256^2 MXU: go wide on N for operand reuse.
        return 512, 1024, 512, 96 << 20, kind
    if "v5" in kind:
        # Lowest HBM BW -> arithmetic intensity matters most; 128 MiB physical.
        return 512, 512, 512, 64 << 20, kind
    # v7x (64 MiB VMEM per TC) and unknown chips: modest but still large tiles.
    return 512, 512, 512, 48 << 20, kind


def _nt_dot(x_ref, w_ref, compute_dtype):
    """x (tm, tk) contracted with W (tn, tk) -> (tm, tn), f32 accumulation."""
    xv = x_ref[...]
    wv = w_ref[...]
    if compute_dtype is not None:
        xv = xv.astype(compute_dtype)
        wv = wv.astype(compute_dtype)
    return jax.lax.dot_general(
        xv, wv,
        dimension_numbers=(((1,), (1,)), ((), ())),
        preferred_element_type=jnp.float32,
    )


def _kernel_single_step(x_ref, w_ref, b_ref, o_ref, *, inv_c, compute_dtype):
    """Whole K in one step: no accumulator state needed."""
    acc = _nt_dot(x_ref, w_ref, compute_dtype)
    o_ref[...] = (acc * inv_c + b_ref[...].astype(jnp.float32)).astype(o_ref.dtype)


def _kernel_multi_k_f32_out(x_ref, w_ref, b_ref, o_ref, *, inv_c, compute_dtype):
    """f32 output: accumulate directly into the K-resident output block (no scratch)."""
    k = pl.program_id(2)

    @pl.when(k == 0)
    def _zero():
        o_ref[...] = jnp.zeros_like(o_ref)

    o_ref[...] += _nt_dot(x_ref, w_ref, compute_dtype)

    @pl.when(k == pl.num_programs(2) - 1)
    def _finalize():
        o_ref[...] = o_ref[...] * inv_c + b_ref[...].astype(jnp.float32)


def _kernel_multi_k_acc(x_ref, w_ref, b_ref, o_ref, acc_ref, *, inv_c, compute_dtype):
    """Narrow output dtype: f32 VMEM accumulator, cast only in the epilogue."""
    k = pl.program_id(2)

    @pl.when(k == 0)
    def _zero():
        acc_ref[...] = jnp.zeros_like(acc_ref)

    acc_ref[...] += _nt_dot(x_ref, w_ref, compute_dtype)

    @pl.when(k == pl.num_programs(2) - 1)
    def _finalize():
        out = acc_ref[...] * inv_c + b_ref[...].astype(jnp.float32)
        o_ref[...] = out.astype(o_ref.dtype)


def equalized_linear(x, weight, bias, *, block_m=None, block_n=None, block_k=None,
                     compute_dtype=None):
    """y = (sqrt(2/in_ch) * x) @ weight.T + bias

    x:      [B, in_ch]
    weight: [out_ch, in_ch]   (PyTorch nn.Linear convention, used as-is, no transpose)
    bias:   [out_ch]
    block_m/n/k: optional tile overrides.
    compute_dtype: optional MXU operand dtype (e.g. jnp.bfloat16) when reduced
                   precision is acceptable; None keeps the native input dtype.
    """
    B, in_ch = x.shape
    out_ch, in_ch_w = weight.shape
    assert in_ch_w == in_ch, (weight.shape, x.shape)
    inv_c = float(math.sqrt(2.0 / in_ch))

    dm, dn, dk, vmem_limit, kind = _device_defaults()
    tm0 = block_m if block_m is not None else dm
    tn0 = block_n if block_n is not None else dn
    tk0 = block_k if block_k is not None else dk

    sub = _sublane_multiple(x.dtype)

    # K: full-dim single tile when it fits (no pad, no extra weight copy).
    if in_ch <= tk0:
        tk, K = in_ch, in_ch
    else:
        tk = _round_up(tk0, 128)
        K = _round_up(in_ch, tk)

    # N: full-dim single tile when it fits.
    if out_ch <= tn0:
        tn, N = out_ch, out_ch
    else:
        tn = _round_up(tn0, 128)
        N = _round_up(out_ch, tn)

    # M: full-dim single tile when it fits; dtype-aware sublane rounding otherwise.
    if B <= tm0:
        tm, M = B, B
    else:
        tm = _round_up(tm0, sub)
        M = _round_up(B, tm)

    # v7x megacore: make sure a parallel axis has >=2 blocks (when it costs no padding)
    # so both TensorCores get work for small-batch GAN linears.
    if "v7" in kind and (M // tm) == 1 and (N // tn) == 1:
        if N >= 256 and N % 256 == 0:
            tn = N // 2
        elif M >= 2 * sub and M % (2 * sub) == 0:
            tm = M // 2

    # Pad only dims that actually span multiple tiles and are misaligned.
    x_p = x if (M == B and K == in_ch) else jnp.pad(x, ((0, M - B), (0, K - in_ch)))
    w_p = weight if (N == out_ch and K == in_ch) else jnp.pad(
        weight, ((0, N - out_ch), (0, K - in_ch)))
    b_p = bias if N == out_ch else jnp.pad(bias, (0, N - out_ch))
    b2d = b_p.reshape(1, N)

    grid = (M // tm, N // tn, K // tk)
    m_blocks, n_blocks, k_blocks = grid
    out_dtype = x.dtype

    if k_blocks == 1:
        kernel = functools.partial(_kernel_single_step, inv_c=inv_c,
                                   compute_dtype=compute_dtype)
        scratch_shapes = []
    elif jnp.dtype(out_dtype) == jnp.float32:
        kernel = functools.partial(_kernel_multi_k_f32_out, inv_c=inv_c,
                                   compute_dtype=compute_dtype)
        scratch_shapes = []
    else:
        kernel = functools.partial(_kernel_multi_k_acc, inv_c=inv_c,
                                   compute_dtype=compute_dtype)
        scratch_shapes = [pltpu.VMEM((tm, tn), jnp.float32)]

    bytes_accessed = int(
        M * K * x.dtype.itemsize * n_blocks            # x re-read once per N tile
        + N * K * weight.dtype.itemsize * m_blocks     # W re-read once per M tile
        + M * N * jnp.dtype(out_dtype).itemsize        # output written once
        + N * bias.dtype.itemsize * m_blocks)          # bias read per M tile (epilogue)

    out = pl.pallas_call(
        kernel,
        out_shape=jax.ShapeDtypeStruct((M, N), out_dtype),
        grid_spec=pltpu.PrefetchScalarGridSpec(
            num_scalar_prefetch=0,
            grid=grid,
            in_specs=[
                pl.BlockSpec((tm, tk), lambda i, j, k: (i, k)),   # x tile    [M, K]
                pl.BlockSpec((tn, tk), lambda i, j, k: (j, k)),   # W tile    [N, K] (native layout)
                pl.BlockSpec((1, tn), lambda i, j, k: (0, j)),    # bias tile [1, N]
            ],
            out_specs=pl.BlockSpec((tm, tn), lambda i, j, k: (i, j)),
            scratch_shapes=scratch_shapes,
        ),
        compiler_params=pltpu.CompilerParams(
            dimension_semantics=("parallel", "parallel", "arbitrary"),
            vmem_limit_bytes=vmem_limit,
        ),
        cost_estimate=pl.CostEstimate(
            flops=2 * M * N * K,
            transcendentals=0,
            bytes_accessed=bytes_accessed,
        ),
    )(x_p, w_p, b2d)

    if M == B and N == out_ch:
        return out
    return out[:B, :out_ch]


if __name__ == "__main__":
    key = jax.random.PRNGKey(0)
    kx, kw, kx2, kw2, kx3, kw3 = jax.random.split(key, 6)

    # Case 1: small GAN-style linear. Single-tile fast path: no padding, no
    # weight transpose, zero extra HBM copies. Matches the module's forward.
    B, in_ch, out_ch = 8, 32, 64
    x = jax.random.normal(kx, (B, in_ch), dtype=jnp.float32)
    weight = jax.random.normal(kw, (out_ch, in_ch), dtype=jnp.float32)   # init.normal(0, 1)
    bias = jnp.zeros((out_ch,), dtype=jnp.float32)                        # init.constant(0)

    y = jax.block_until_ready(equalized_linear(x, weight, bias))
    inv_c = math.sqrt(2.0 / in_ch)
    y_ref = jnp.dot(inv_c * x, weight.T, precision=jax.lax.Precision.HIGHEST) + bias
    assert y.shape == (B, out_ch)
    assert jnp.allclose(y, y_ref, atol=2e-2, rtol=2e-2), float(jnp.max(jnp.abs(y - y_ref)))

    # Case 2: force small tiles so the multi-step (M, N, K) grid and the
    # in-place f32 accumulator init/finalize paths are actually exercised.
    B2, in2, out2 = 128, 384, 256
    x2 = jax.random.normal(kx2, (B2, in2), dtype=jnp.float32)
    w2 = jax.random.normal(kw2, (out2, in2), dtype=jnp.float32)
    b2 = jnp.zeros((out2,), dtype=jnp.float32)
    y2 = jax.block_until_ready(
        equalized_linear(x2, w2, b2, block_m=64, block_n=128, block_k=128))
    inv_c2 = math.sqrt(2.0 / in2)
    y2_ref = jnp.dot(inv_c2 * x2, w2.T, precision=jax.lax.Precision.HIGHEST) + b2
    assert y2.shape == (B2, out2)
    assert jnp.allclose(y2, y2_ref, atol=2e-2, rtol=2e-2), float(jnp.max(jnp.abs(y2 - y2_ref)))

    # Case 3: bf16 inputs/outputs with a multi-K grid — exercises the f32
    # VMEM-scratch accumulator kernel and the dtype-aware sublane rounding.
    B3, in3, out3 = 32, 256, 128
    x3 = jax.random.normal(kx3, (B3, in3), dtype=jnp.float32).astype(jnp.bfloat16)
    w3 = jax.random.normal(kw3, (out3, in3), dtype=jnp.float32).astype(jnp.bfloat16)
    b3 = jnp.zeros((out3,), dtype=jnp.bfloat16)
    y3 = jax.block_until_ready(equalized_linear(x3, w3, b3, block_k=128))
    inv_c3 = math.sqrt(2.0 / in3)
    y3_ref = jnp.dot(inv_c3 * x3.astype(jnp.float32), w3.astype(jnp.float32).T,
                     precision=jax.lax.Precision.HIGHEST) + b3.astype(jnp.float32)
    assert y3.shape == (B3, out3)
    assert jnp.allclose(y3.astype(jnp.float32), y3_ref, atol=8e-2, rtol=8e-2), \
        float(jnp.max(jnp.abs(y3.astype(jnp.float32) - y3_ref)))

    print("KERNEL_OK")
</pallas_src>

<mosaic_0001>
module attributes {stable_mosaic.version = 11 : i64} {
  func.func @_kernel_single_step(%arg0: i32, %arg1: i32, %arg2: i32, %arg3: memref<8x32xf32, #tpu.memory_space<vmem>>, %arg4: memref<64x32xf32, #tpu.memory_space<vmem>>, %arg5: memref<1x64xf32, #tpu.memory_space<vmem>>, %arg6: memref<8x64xf32, #tpu.memory_space<vmem>>) attributes {dimension_semantics = [#tpu.dimension_semantics<parallel>, #tpu.dimension_semantics<parallel>, #tpu.dimension_semantics<arbitrary>], iteration_bounds = array<i64: 1, 1, 1>, scalar_prefetch = 0 : i64, scratch_operands = 0 : i64, tpu.core_type = #tpu.core_type<tc>, window_params = [{transform_indices = @transform_0, window_bounds = array<i64: 8, 32>}, {transform_indices = @transform_1, window_bounds = array<i64: 64, 32>}, {transform_indices = @transform_2, window_bounds = array<i64: 1, 64>}, {transform_indices = @transform_3, window_bounds = array<i64: 8, 64>}]} {
    %c0 = arith.constant 0 : index
    %c0_0 = arith.constant 0 : index
    %0 = vector.load %arg3[%c0, %c0_0] : memref<8x32xf32, #tpu.memory_space<vmem>>, vector<8x32xf32>
    %c0_1 = arith.constant 0 : index
    %c0_2 = arith.constant 0 : index
    %1 = vector.load %arg4[%c0_1, %c0_2] : memref<64x32xf32, #tpu.memory_space<vmem>>, vector<64x32xf32>
    %cst = arith.constant dense<0.000000e+00> : vector<8x64xf32>
    %2 = tpu.matmul %0, %1, %cst {dimension_numbers = #tpu.dot_dimension_numbers<[1], [1], [0], [0], [0, 0, 1, 0], [], []>} : vector<8x32xf32>, vector<64x32xf32>, vector<8x64xf32> -> vector<8x64xf32>
    %cst_3 = arith.constant 2.500000e-01 : f32
    %3 = vector.broadcast %cst_3 : f32 to vector<8x64xf32>
    %4 = arith.mulf %2, %3 : vector<8x64xf32>
    %c0_4 = arith.constant 0 : index
    %c0_5 = arith.constant 0 : index
    %5 = vector.load %arg5[%c0_4, %c0_5] : memref<1x64xf32, #tpu.memory_space<vmem>>, vector<1x64xf32>
    %6 = vector.broadcast %5 : vector<1x64xf32> to vector<8x64xf32>
    %7 = arith.addf %4, %6 : vector<8x64xf32>
    %c0_6 = arith.constant 0 : index
    %c0_7 = arith.constant 0 : index
    %8 = vector.load %arg6[%c0_6, %c0_7] : memref<8x64xf32, #tpu.memory_space<vmem>>, vector<8x64xf32>
    tpu.vector_store %arg6[%c0_6, %c0_7], %7 {strides = array<i32>} : memref<8x64xf32, #tpu.memory_space<vmem>>, vector<8x64xf32>,
    return
  }
  func.func @transform_0(%arg0: i32, %arg1: i32, %arg2: i32) -> (i32, i32) {
    %c0_i32 = arith.constant 0 : i32
    return %arg0, %arg2 : i32, i32
  }
  func.func @transform_1(%arg0: i32, %arg1: i32, %arg2: i32) -> (i32, i32) {
    %c0_i32 = arith.constant 0 : i32
    return %arg1, %arg2 : i32, i32
  }
  func.func @transform_2(%arg0: i32, %arg1: i32, %arg2: i32) -> (i32, i32) {
    %c0_i32 = arith.constant 0 : i32
    %c0_i32_0 = arith.constant 0 : i32
    return %c0_i32, %arg1 : i32, i32
  }
  func.func @transform_3(%arg0: i32, %arg1: i32, %arg2: i32) -> (i32, i32) {
    %c0_i32 = arith.constant 0 : i32
    return %arg0, %arg1 : i32, i32
  }
}

</mosaic_0001>

<bundles_post_ra>
// kernel: tpu_custom_call.1
= control target key start
LH: loop header
LB: loop body
LE: loop exit
PB: predicated region body
PF: predicated region fallthrough
CT: control target
= control target key end

     0   :  { %vm24_vm0 = vcmask 261120   ;;  %v210_v1 = vmov 0.0   ;;  %vm211_vm1 = vmmov 0   ;;  %s275_s0 = inlined_call_operand.vmem [shape: f32[8,32], index: 0, kind: input, shape index: {}]   ;;  %s276_s1 = inlined_call_operand.vmem [shape: f32[64,32], index: 1, kind: input, shape index: {}]   ;;  %s277_s2 = inlined_call_operand.vmem [shape: f32[1,64], index: 2, kind: input, shape index: {}]   ;;  %s278_s3 = inlined_call_operand.hbm [shape: f32[8,64], index: 3, kind: output, shape index: {}]  }
   0x1   :  { %v23_v0 = vld [vmem:[%s276_s1 + $0x38] sm:$0xff]  ;;  %166 = vmatprep.subr.mxu0 %v210_v1  ;;  %182 = vmatprep.mubr.msk.f32.mxu0 %vm211_vm1, %v210_v1  ;;  %v22_v2 = vld [vmem:[%s276_s1 + $0x30] sm:$0xff] }
   0x2   :  { %167 = vmatpush3.xpose.msk.msra.mxu0 %vm24_vm0, %v23_v0 }
   0x3   :  { %168 = vmatprep.subr.mxu0 %v210_v1 }
   0x4   :  { %8 = vsyncpa [#allocation3], 0  ;;  %v21_v3 = vld [vmem:[%s276_s1 + $0x28] sm:$0xff]  ;;  %v20_v4 = vld [vmem:[%s276_s1 + $0x20] sm:$0xff]  ;;  %s212_s5 = smov [#allocation2]   ;;  %vm131_vm2 = vcmask 523264  }
   0x5   :  { %v19_v5 = vld [vmem:[%s276_s1 + $0x18] sm:$0xff]  ;;  %v18_v6 = vld [vmem:[%s276_s1 + $0x10] sm:$0xff]  ;;  %v17_v7 = vld [vmem:[%s276_s1 + $0x8] sm:$0xff]  ;;  %s139_s6 = sshll.u32 %s212_s5, 4  ;;  %s140_s6 = int_to_ptr.vmem [resolvable:$true] %s139_s6 }
   0x6   :  { %169 = vmatpush3.xpose.msk.msra.mxu0 %vm24_vm0, %v22_v2  ;;  %v16_v8 = vld [vmem:[%s276_s1] sm:$0xff]  ;;  %s188_s1 = scalar_lea.vmem %s140_s6, 128  ;;  %p193_p1 = scmp.lt.s32.totalorder %s140_s6, %s140_s6 }
   0x7   :  { %170 = vmatprep.subr.mxu0 %v210_v1  ;;  %v15_v9 = vld [vmem:[%s275_s0] sm:$0xff]  ;;  %p189_p0 = scmp.ne.s32.totalorder %s140_s6, %s188_s1  ;;  %p194_p2 = scmp.lt.s32.totalorder %s188_s1, %s188_s1 }
   0x8   :  { %v156_v11 = vld [vmem:[%s277_s2] ss:$0 sm:$0xff] }
   0x9   :  { %p195_p3 = por %p194_p2, %p193_p1 }
   0xa   :  { %171 = vmatpush3.xpose.msk.msra.mxu0 %vm24_vm0, %v21_v3 }
   0xb   :  { %172 = vmatprep.subr.mxu0 %v210_v1  ;;  %p196_p4 = pnand %p195_p3, %p189_p0 }
   0xe   :  { %173 = vmatpush3.xpose.msk.msra.mxu0 %vm24_vm0, %v20_v4 }
   0xf   :  { %174 = vmatprep.subr.mxu0 %v210_v1 }
  0x12   :  { %175 = vmatpush3.xpose.msk.msra.mxu0 %vm24_vm0, %v19_v5 }
  0x13   :  { %176 = vmatprep.subr.mxu0 %v210_v1 }
  0x16   :  { %177 = vmatpush3.xpose.msk.msra.mxu0 %vm24_vm0, %v18_v6 }
  0x17   :  { %178 = vmatprep.subr.mxu0 %v210_v1 }
  0x1a   :  { %179 = vmatpush3.xpose.msk.msra.mxu0 %vm24_vm0, %v17_v7 }
  0x1b   :  { %180 = vmatprep.subr.mxu0 %v210_v1 }
  0x1e   :  { %181 = vmatpush3.xpose.msk.msra.mxu0 %vm24_vm0, %v16_v8 }
  0x21   :  { %183 = vmatmul.mubr.msk.f32.vlgmr.msra.gmra.mxu0 %vm24_vm0, %v15_v9 }
  0xe1   :  { %v118_v10 = vpop.f32.mrf.mxu0 }
  0xe2   :  { %v122_v12 = vmul.f32 0.25, %v118_v10 }
  0xe3   :  { %v184_v13 = vpop.f32.mrf.mxu0 }
  0xe4   :  { %v130_v14 = vadd.f32 %v156_v11, %v122_v12 }
  0xe6   :  { %132 = vst.msk [vmem:[#allocation2] sm:$0xff] %vm131_vm2, %v130_v14 }
  0xe7   :  { %199 = shalt.err (!%p196_p4)
}
  0xe8   :  { %142 = dma.vmem_to_hbm [thread:$0]  %s140_s6, 128, %s278_s3, [#allocation3]  }
  0xe9   :  { %208 = dma.done.wait [#allocation3], 128  }
  0xea   :  { %209 = vsyncadd [#allocation3], 4294967168 }
  0xeb   :  { %146 = vsyncpa [#allocation3], 1 }

</bundles_post_ra>
